<compile_context>
chip_gen: v7x
topology: tpu7x:2x2x1
jax: 0.10.0
libtpu: 0.0.40
codegen_flags: <defaults>
</compile_context>

<pallas_src>
import jax
import jax.numpy as jnp
from jax import lax
from jax.experimental import pallas as pl
from jax.experimental.pallas import tpu as pltpu


# ---------------------------------------------------------------------------
# Pallas kernel: full MLP forward on one batch tile, untransposed I/O.
#   x_ref  : [tb, obs] f32 batch tile
#   w*_ref : PyTorch [out, in] weights (bf16), b*_ref: [1, out] biases (f32)
#   out_ref: [tb, A]  f32
# ---------------------------------------------------------------------------
def qnetwork_kernel(x_ref,
                    w0_ref, b0_ref,
                    w1_ref, b1_ref,
                    w2_ref, b2_ref,
                    out_ref):
    wdt = w0_ref.dtype
    # Contract the `in` dim of the PyTorch [out, in] weights (x @ W^T on the MXU).
    dn = (((1,), (1,)), ((), ()))

    # Layer 0: relu(x @ W0^T + b0) -> [tb, H]
    h = lax.dot_general(x_ref[...].astype(wdt), w0_ref[...], dn,
                        preferred_element_type=jnp.float32) + b0_ref[...]
    h = jnp.maximum(h, 0.0)

    # Layer 1: relu(h @ W1^T + b1) -> [tb, H]
    h = lax.dot_general(h.astype(wdt), w1_ref[...], dn,
                        preferred_element_type=jnp.float32) + b1_ref[...]
    h = jnp.maximum(h, 0.0)

    # Output layer: h @ W2^T + b2 -> [tb, A]  (no activation), stored in [B, A] layout
    q = lax.dot_general(h.astype(wdt), w2_ref[...], dn,
                        preferred_element_type=jnp.float32) + b2_ref[...]
    out_ref[...] = q.astype(out_ref.dtype)


# ---------------------------------------------------------------------------
# Wrapper: single pallas_call, batch-gridded, no host-side transposes/pads/slices.
# ---------------------------------------------------------------------------
def qnetwork_forward(x, params, *, block_b=2048):
    """QNetwork MLP forward.

    x:      [B, obs] float32
    params: w0 [H,obs] bf16, b0 [1,H] f32, w1 [H,H] bf16, b1 [1,H] f32,
            w2 [A,H] bf16, b2 [1,A] f32   (PyTorch [out, in] weight layout)
    returns q: [B, A] float32
    """
    B, obs = x.shape
    H = params["w0"].shape[0]
    A = params["w2"].shape[0]

    # Batch tile selection:
    #  * B > block_b: fixed lane-aligned tile (multiple of 128), >=2 grid blocks.
    #  * B <= block_b: try to split into >=2 lane-aligned blocks so both v7x
    #    TensorCores get work; otherwise one full-batch block (block == full dim
    #    satisfies the (8,128) rule). Partial last blocks are masked by Pallas.
    if B > block_b:
        tb = block_b
    else:
        half = ((B // 2) // 128) * 128
        tb = half if half >= 128 else B
    num_blocks = pl.cdiv(B, tb)

    flops = 2 * B * (obs * H + H * H + H * A)
    bytes_accessed = int(
        x.size * x.dtype.itemsize
        + sum(int(v.size) * v.dtype.itemsize for v in params.values())
        + B * A * 4)

    def const_spec(shape):
        # Constant block index -> operand stays VMEM-resident; DMA'd only once.
        return pl.BlockSpec(shape, lambda i: (0, 0))

    q = pl.pallas_call(
        qnetwork_kernel,
        out_shape=jax.ShapeDtypeStruct((B, A), jnp.float32),
        grid=(num_blocks,),
        in_specs=[
            pl.BlockSpec((tb, obs), lambda i: (i, 0)),
            const_spec(params["w0"].shape), const_spec(params["b0"].shape),
            const_spec(params["w1"].shape), const_spec(params["b1"].shape),
            const_spec(params["w2"].shape), const_spec(params["b2"].shape),
        ],
        out_specs=pl.BlockSpec((tb, A), lambda i: (i, 0)),
        compiler_params=pltpu.CompilerParams(
            dimension_semantics=("parallel",)),
        cost_estimate=pl.CostEstimate(
            flops=flops, transcendentals=0, bytes_accessed=bytes_accessed),
    )(x,
      params["w0"], params["b0"],
      params["w1"], params["b1"],
      params["w2"], params["b2"])

    return q  # [B, A] — no trailing transpose/slice


# ---------------------------------------------------------------------------
# Deterministic parameter init (PyTorch-Linear-like uniform fan-in init),
# stored in [out, in] layout; weights bf16, biases [1, out] f32.
# ---------------------------------------------------------------------------
def init_params(key, obs_dim, hidden, n_actions, weight_dtype=jnp.bfloat16):
    def linear_init(k, fan_in, fan_out):
        kw, kb = jax.random.split(k)
        bound = 1.0 / jnp.sqrt(float(fan_in))
        w = jax.random.uniform(kw, (fan_out, fan_in), jnp.float32, -bound, bound)
        b = jax.random.uniform(kb, (1, fan_out), jnp.float32, -bound, bound)
        return w.astype(weight_dtype), b

    k0, k1, k2 = jax.random.split(key, 3)
    w0, b0 = linear_init(k0, obs_dim, hidden)
    w1, b1 = linear_init(k1, hidden, hidden)
    w2, b2 = linear_init(k2, hidden, n_actions)
    return dict(w0=w0, b0=b0, w1=w1, b1=b1, w2=w2, b2=b2)


def reference_forward(x, p):
    """Plain-JAX reference mirroring the kernel's bf16-matmul / f32-elementwise math."""
    wdt = p["w0"].dtype
    dn = (((1,), (1,)), ((), ()))
    h = jnp.maximum(lax.dot_general(x.astype(wdt), p["w0"], dn,
                                    preferred_element_type=jnp.float32) + p["b0"], 0.0)
    h = jnp.maximum(lax.dot_general(h.astype(wdt), p["w1"], dn,
                                    preferred_element_type=jnp.float32) + p["b1"], 0.0)
    return lax.dot_general(h.astype(wdt), p["w2"], dn,
                           preferred_element_type=jnp.float32) + p["b2"]


# TODO(synk): QNetwork.get_values (alpha * log(sum_a pi_k * exp(q/alpha)) + the action
# gather) is not part of forward(); fuse it as an in-kernel epilogue later so q never
# round-trips HBM. If fused, padded tail rows must be masked before the reduction.
# TODO(synk): if the RL loop evaluates both online and target networks, stack the two
# weight sets and add a leading grid axis so one pallas_call serves both (halves the
# dispatch / pipeline fixed cost, which dominates for this tiny MLP).

if __name__ == "__main__":
    OBS, HIDDEN, ACTIONS = 8, 32, 4

    key = jax.random.PRNGKey(0)
    kx, kp, kx2, kx3 = jax.random.split(key, 4)
    params = init_params(kp, OBS, HIDDEN, ACTIONS)

    # Small-batch check (shapes consistent with the module: batch=2, hidden=32).
    x_small = jax.random.normal(kx, (2, OBS), dtype=jnp.float32)
    q_small = jax.block_until_ready(qnetwork_forward(x_small, params))
    assert q_small.shape == (2, ACTIONS)
    assert jnp.allclose(q_small, reference_forward(x_small, params),
                        atol=2e-3, rtol=2e-3), "small-batch mismatch vs reference"

    # Ragged batch: 3 blocks of 128 with a masked partial last block (no host pad).
    x_mid = jax.random.normal(kx2, (300, OBS), dtype=jnp.float32)
    q_mid = jax.block_until_ready(qnetwork_forward(x_mid, params))
    assert q_mid.shape == (300, ACTIONS)
    assert jnp.allclose(q_mid, reference_forward(x_mid, params),
                        atol=2e-3, rtol=2e-3), "mid-batch mismatch vs reference"

    # Batch > default tile: exercises the multi-block pipelined path (2048 + partial).
    x_big = jax.random.normal(kx3, (2600, OBS), dtype=jnp.float32)
    q_big = jax.block_until_ready(qnetwork_forward(x_big, params))
    assert q_big.shape == (2600, ACTIONS)
    assert jnp.allclose(q_big, reference_forward(x_big, params),
                        atol=2e-3, rtol=2e-3), "large-batch mismatch vs reference"

    print("KERNEL_OK")
</pallas_src>

<mosaic_0001>
module attributes {stable_mosaic.version = 11 : i64} {
  func.func @qnetwork_kernel(%arg0: i32, %arg1: memref<2x8xf32, #tpu.memory_space<vmem>>, %arg2: memref<32x8xbf16, #tpu.memory_space<vmem>>, %arg3: memref<1x32xf32, #tpu.memory_space<vmem>>, %arg4: memref<32x32xbf16, #tpu.memory_space<vmem>>, %arg5: memref<1x32xf32, #tpu.memory_space<vmem>>, %arg6: memref<4x32xbf16, #tpu.memory_space<vmem>>, %arg7: memref<1x4xf32, #tpu.memory_space<vmem>>, %arg8: memref<2x4xf32, #tpu.memory_space<vmem>>) attributes {dimension_semantics = [#tpu.dimension_semantics<parallel>], iteration_bounds = array<i64: 1>, scalar_prefetch = 0 : i64, scratch_operands = 0 : i64, tpu.core_type = #tpu.core_type<tc>, window_params = [{transform_indices = @transform_0, window_bounds = array<i64: 2, 8>}, {pipeline_mode = #tpu.pipeline_mode<synchronous>, transform_indices = @transform_1, window_bounds = array<i64: 32, 8>}, {pipeline_mode = #tpu.pipeline_mode<synchronous>, transform_indices = @transform_2, window_bounds = array<i64: 1, 32>}, {pipeline_mode = #tpu.pipeline_mode<synchronous>, transform_indices = @transform_3, window_bounds = array<i64: 32, 32>}, {pipeline_mode = #tpu.pipeline_mode<synchronous>, transform_indices = @transform_4, window_bounds = array<i64: 1, 32>}, {pipeline_mode = #tpu.pipeline_mode<synchronous>, transform_indices = @transform_5, window_bounds = array<i64: 4, 32>}, {pipeline_mode = #tpu.pipeline_mode<synchronous>, transform_indices = @transform_6, window_bounds = array<i64: 1, 4>}, {transform_indices = @transform_7, window_bounds = array<i64: 2, 4>}]} {
    %c0 = arith.constant 0 : index
    %c0_0 = arith.constant 0 : index
    %0 = vector.load %arg1[%c0, %c0_0] : memref<2x8xf32, #tpu.memory_space<vmem>>, vector<2x8xf32>
    %1 = arith.truncf %0 : vector<2x8xf32> to vector<2x8xbf16>
    %c0_1 = arith.constant 0 : index
    %c0_2 = arith.constant 0 : index
    %2 = vector.load %arg2[%c0_1, %c0_2] : memref<32x8xbf16, #tpu.memory_space<vmem>>, vector<32x8xbf16>
    %cst = arith.constant dense<0.000000e+00> : vector<2x32xf32>
    %3 = tpu.matmul %1, %2, %cst {dimension_numbers = #tpu.dot_dimension_numbers<[1], [1], [0], [0], [0, 0, 1, 0], [], []>} : vector<2x8xbf16>, vector<32x8xbf16>, vector<2x32xf32> -> vector<2x32xf32>
    %c0_3 = arith.constant 0 : index
    %c0_4 = arith.constant 0 : index
    %4 = vector.load %arg3[%c0_3, %c0_4] : memref<1x32xf32, #tpu.memory_space<vmem>>, vector<1x32xf32>
    %5 = vector.broadcast %4 : vector<1x32xf32> to vector<2x32xf32>
    %6 = arith.addf %3, %5 : vector<2x32xf32>
    %cst_5 = arith.constant 0.000000e+00 : f32
    %7 = vector.broadcast %cst_5 : f32 to vector<2x32xf32>
    %8 = arith.maximumf %6, %7 : vector<2x32xf32>
    %9 = arith.truncf %8 : vector<2x32xf32> to vector<2x32xbf16>
    %c0_6 = arith.constant 0 : index
    %c0_7 = arith.constant 0 : index
    %10 = vector.load %arg4[%c0_6, %c0_7] : memref<32x32xbf16, #tpu.memory_space<vmem>>, vector<32x32xbf16>
    %cst_8 = arith.constant dense<0.000000e+00> : vector<2x32xf32>
    %11 = tpu.matmul %9, %10, %cst_8 {dimension_numbers = #tpu.dot_dimension_numbers<[1], [1], [0], [0], [0, 0, 1, 0], [], []>} : vector<2x32xbf16>, vector<32x32xbf16>, vector<2x32xf32> -> vector<2x32xf32>
    %c0_9 = arith.constant 0 : index
    %c0_10 = arith.constant 0 : index
    %12 = vector.load %arg5[%c0_9, %c0_10] : memref<1x32xf32, #tpu.memory_space<vmem>>, vector<1x32xf32>
    %13 = vector.broadcast %12 : vector<1x32xf32> to vector<2x32xf32>
    %14 = arith.addf %11, %13 : vector<2x32xf32>
    %cst_11 = arith.constant 0.000000e+00 : f32
    %15 = vector.broadcast %cst_11 : f32 to vector<2x32xf32>
    %16 = arith.maximumf %14, %15 : vector<2x32xf32>
    %17 = arith.truncf %16 : vector<2x32xf32> to vector<2x32xbf16>
    %c0_12 = arith.constant 0 : index
    %c0_13 = arith.constant 0 : index
    %18 = vector.load %arg6[%c0_12, %c0_13] : memref<4x32xbf16, #tpu.memory_space<vmem>>, vector<4x32xbf16>
    %cst_14 = arith.constant dense<0.000000e+00> : vector<2x4xf32>
    %19 = tpu.matmul %17, %18, %cst_14 {dimension_numbers = #tpu.dot_dimension_numbers<[1], [1], [0], [0], [0, 0, 1, 0], [], []>} : vector<2x32xbf16>, vector<4x32xbf16>, vector<2x4xf32> -> vector<2x4xf32>
    %c0_15 = arith.constant 0 : index
    %c0_16 = arith.constant 0 : index
    %20 = vector.load %arg7[%c0_15, %c0_16] : memref<1x4xf32, #tpu.memory_space<vmem>>, vector<1x4xf32>
    %21 = vector.broadcast %20 : vector<1x4xf32> to vector<2x4xf32>
    %22 = arith.addf %19, %21 : vector<2x4xf32>
    %c0_17 = arith.constant 0 : index
    %c0_18 = arith.constant 0 : index
    %23 = vector.load %arg8[%c0_17, %c0_18] : memref<2x4xf32, #tpu.memory_space<vmem>>, vector<2x4xf32>
    tpu.vector_store %arg8[%c0_17, %c0_18], %22 {strides = array<i32>} : memref<2x4xf32, #tpu.memory_space<vmem>>, vector<2x4xf32>,
    return
  }
  func.func @transform_0(%arg0: i32) -> (i32, i32) {
    %c0_i32 = arith.constant 0 : i32
    %c0_i32_0 = arith.constant 0 : i32
    return %arg0, %c0_i32 : i32, i32
  }
  func.func @transform_1(%arg0: i32) -> (i32, i32) {
    %c0_i32 = arith.constant 0 : i32
    %c0_i32_0 = arith.constant 0 : i32
    %c0_i32_1 = arith.constant 0 : i32
    return %c0_i32, %c0_i32_0 : i32, i32
  }
  func.func @transform_2(%arg0: i32) -> (i32, i32) {
    %c0_i32 = arith.constant 0 : i32
    %c0_i32_0 = arith.constant 0 : i32
    %c0_i32_1 = arith.constant 0 : i32
    return %c0_i32, %c0_i32_0 : i32, i32
  }
  func.func @transform_3(%arg0: i32) -> (i32, i32) {
    %c0_i32 = arith.constant 0 : i32
    %c0_i32_0 = arith.constant 0 : i32
    %c0_i32_1 = arith.constant 0 : i32
    return %c0_i32, %c0_i32_0 : i32, i32
  }
  func.func @transform_4(%arg0: i32) -> (i32, i32) {
    %c0_i32 = arith.constant 0 : i32
    %c0_i32_0 = arith.constant 0 : i32
    %c0_i32_1 = arith.constant 0 : i32
    return %c0_i32, %c0_i32_0 : i32, i32
  }
  func.func @transform_5(%arg0: i32) -> (i32, i32) {
    %c0_i32 = arith.constant 0 : i32
    %c0_i32_0 = arith.constant 0 : i32
    %c0_i32_1 = arith.constant 0 : i32
    return %c0_i32, %c0_i32_0 : i32, i32
  }
  func.func @transform_6(%arg0: i32) -> (i32, i32) {
    %c0_i32 = arith.constant 0 : i32
    %c0_i32_0 = arith.constant 0 : i32
    %c0_i32_1 = arith.constant 0 : i32
    return %c0_i32, %c0_i32_0 : i32, i32
  }
  func.func @transform_7(%arg0: i32) -> (i32, i32) {
    %c0_i32 = arith.constant 0 : i32
    %c0_i32_0 = arith.constant 0 : i32
    return %arg0, %c0_i32 : i32, i32
  }
}

</mosaic_0001>

<bundles_post_ra>
// kernel: tpu_custom_call.1
= control target key start
LH: loop header
LB: loop body
LE: loop exit
PB: predicated region body
PF: predicated region fallthrough
CT: control target
= control target key end

     0   :  { %v317_v1 = vmov 0.0   ;;  %vm51_vm0 = vcmask 64512   ;;  %vm318_vm1 = vmmov 0   ;;  %vm124_vm2 = vcmask 261120   ;;  %s410_s0 = inlined_call_operand.vmem [shape: f32[2,8], index: 0, kind: input, shape index: {}]   ;;  %s411_s1 = inlined_call_operand.vmem [shape: bf16[32,8], index: 1, kind: input, shape index: {}]   ;;  %s412_s2 = inlined_call_operand.vmem [shape: f32[1,32], index: 2, kind: input, shape index: {}]   ;;  %s413_s3 = inlined_call_operand.vmem [shape: bf16[32,32], index: 3, kind: input, shape index: {}]   ;;  %s414_s4 = inlined_call_operand.vmem [shape: f32[1,32], index: 4, kind: input, shape index: {}]   ;;  %s415_s5 = inlined_call_operand.vmem [shape: bf16[4,32], index: 5, kind: input, shape index: {}]   ;;  %s416_s6 = inlined_call_operand.vmem [shape: f32[1,4], index: 6, kind: input, shape index: {}]   ;;  %s417_s7 = inlined_call_operand.hbm [shape: f32[2,4], index: 7, kind: output, shape index: {}]  }
   0x1   :  { %v289_v0 = vld [vmem:[%s411_s1] sm:$0xff]   ;;  %264 = vmatprep.subr.bf16.mxu0 %v317_v1  ;;  %272 = vmatprep.subr.bf16.mxu1 %v317_v1  ;;  %v290_v4 = vld [vmem:[%s411_s1 + $0x8] sm:$0xff]  }
   0x2   :  { %v56_v2 = vsel %vm51_vm0, %v289_v0, 0  ;;  %268 = vmatprep.mubr.msk.bf16.mxu0 %vm318_vm1, %v317_v1  ;;  %v291_v3 = vld [vmem:[%s413_s3] sm:$0xff]   ;;  %276 = vmatprep.mubr.msk.bf16.mxu1 %vm318_vm1, %v317_v1 }
   0x3   :  { %265 = vmatpush3.bf16.xpose.msra.mxu0 %v56_v2  ;;  %v129_v5 = vsel %vm124_vm2, %v291_v3, 0 }
   0x4   :  { %266 = vmatprep.subr.bf16.mxu0 %v317_v1 }
   0x5   :  { %12 = vsyncpa [#allocation3], 0  ;;  %273 = vmatpush3.bf16.xpose.msra.mxu1 %v129_v5  ;;  %v59_v6 = vsel %vm51_vm0, %v290_v4, 0  ;;  %v28_v7 = vld [vmem:[%s410_s0] sm:$0x3]  ;;  %v292_v9 = vld [vmem:[%s413_s3 + $0x8] sm:$0xff]  }
   0x6   :  { %274 = vmatprep.subr.bf16.mxu1 %v317_v1  ;;  %v29_v8 = vpack.c.bf16 %v28_v7, %v28_v7  ;;  %v132_v10 = vsel %vm124_vm2, %v292_v9, 0  ;;  %v176_v11 = vld [vmem:[%s415_s5] sm:$0x3]  ;;  %s319_s14 = smov [#allocation2]   ;;  %vm230_vm3 = vcmask 25600  }
   0x7   :  { %v188_v12 = vsel %vm124_vm2, %v176_v11, 0  ;;  %v246_v13 = vld [vmem:[%s412_s2] ss:$0 sm:$0xff]  ;;  %s238_s15 = sshll.u32 %s319_s14, 4  ;;  %s239_s15 = int_to_ptr.vmem [resolvable:$true] %s238_s15 }
   0x8   :  { %v250_v21 = vld [vmem:[%s414_s4] ss:$0 sm:$0xff]  ;;  %s293_s4 = scalar_lea.vmem %s239_s15, 32  ;;  %p298_p1 = scmp.lt.s32.totalorder %s239_s15, %s239_s15 }
   0x9   :  { %v254_v29 = vld [vmem:[%s416_s6] ss:$0 sm:$0xff]  ;;  %p294_p0 = scmp.ne.s32.totalorder %s239_s15, %s293_s4  ;;  %p299_p2 = scmp.lt.s32.totalorder %s293_s4, %s293_s4 }
   0xb   :  { %267 = vmatpush3.bf16.xpose.msra.mxu0 %v59_v6  ;;  %p300_p3 = por %p299_p2, %p298_p1 }
   0xc   :  { %280 = vmatprep.subr.bf16.mxu0 %v317_v1 }
   0xd   :  { %275 = vmatpush3.bf16.xpose.msra.mxu1 %v132_v10  ;;  %p301_p4 = pnand %p300_p3, %p294_p0 }
  0x12   :  { %269 = vmatmul.mubr.msk.bf16.vlgmr.msra.gmra.mrb[0].mxu0 %vm51_vm0, %v29_v8 }
  0x13   :  { %282 = vmatprep.mubr.msk.bf16.mxu0 %vm318_vm1, %v317_v1  ;;  %281 = vmatpush3.bf16.xpose.msra.mxu0 %v188_v12 }
  0xe5   :  { %v95_v14 = vpop.f32.mrb[0].mxu0 }
  0xe6   :  { %v96_v15 = vadd.f32 %v246_v13, %v95_v14  ;;  %v270_v16 = vpop.f32.mrb[1].mxu0 }
  0xe7   :  { %v98_v17 = vpop.f32.mrb[2].mxu0 }
  0xe8   :  { %v101_v18 = vmax.f32 %v96_v15, 0.0  ;;  %v271_v19 = vpop.f32.mrb[3].mxu0 }
  0xea   :  { %v102_v20 = vpack.c.bf16 %v101_v18, %v101_v18 }
  0xec   :  { %277 = vmatmul.mubr.msk.bf16.vlgmr.msra.gmra.mrb[0].mxu1 %vm124_vm2, %v102_v20 }
 0x1bf   :  { %v168_v22 = vpop.f32.mrb[0].mxu1 }
 0x1c0   :  { %v169_v23 = vadd.f32 %v250_v21, %v168_v22  ;;  %v278_v24 = vpop.f32.mrb[1].mxu1 }
 0x1c1   :  { %v171_v25 = vpop.f32.mrb[2].mxu1 }
 0x1c2   :  { %v174_v26 = vmax.f32 %v169_v23, 0.0  ;;  %v279_v27 = vpop.f32.mrb[3].mxu1 }
 0x1c4   :  { %v175_v28 = vpack.c.bf16 %v174_v26, %v174_v26 }
 0x1c6   :  { %283 = vmatmul.mubr.msk.bf16.vlgmr.msra.gmra.mrb[4].mxu0 %vm124_vm2, %v175_v28 }
 0x299   :  { %v224_v30 = vpop.f32.mrb[4].mxu0 }
 0x29a   :  { %v225_v31 = vadd.f32 %v254_v29, %v224_v30  ;;  %v284_v32 = vpop.f32.mrb[5].mxu0 }
 0x29b   :  { %v227_v33 = vpop.f32.mrb[6].mxu0 }
 0x29c   :  { %v285_v34 = vpop.f32.mrb[7].mxu0  ;;  %231 = vst.msk [vmem:[#allocation2] sm:$0x3] %vm230_vm3, %v225_v31 }
 0x29d   :  { %304 = shalt.err (!%p301_p4)
}
 0x29e   :  { %s305_s6 = scalar_lea.hbm %s417_s7, 32 }
 0x29f   :  { %p306_p5 = scmp.ne.s32.totalorder %s417_s7, %s305_s6  ;;  %p309_p6 = scmp.lt.u32.totalorder %s305_s6, %s417_s7 }
 0x2a1   :  { %p311_p7 = pnand %p309_p6, %p306_p5 }
 0x2a3   :  { %314 = shalt.err (!%p311_p7)
}
 0x2a4   :  { %241 = dma.vmem_to_hbm [thread:$0]  %s239_s15, 32, %s417_s7, [#allocation3]  }
 0x2a5   :  { %315 = dma.done.wait [#allocation3], 32  }
 0x2a6   :  { %316 = vsyncadd [#allocation3], 4294967264 }
 0x2a7   :  { %245 = vsyncpa [#allocation3], 1 }

</bundles_post_ra>
